<compile_context>
chip_gen: v7x
topology: tpu7x:2x2x1
jax: 0.10.0
libtpu: 0.0.40
codegen_flags: <defaults>
</compile_context>

<pallas_src>
import functools

import jax
import jax.numpy as jnp
from jax.experimental import pallas as pl
from jax.experimental.pallas import tpu as pltpu

_LANES = 128
_VMEM_PIPELINE_BUDGET = 12 << 20   # bytes of double-buffered input+output tiles
_VMEM_LIMIT_BYTES = 32 << 20       # scoped VMEM limit; safe on v5e/v6e/v7x


def _round_up(a, b):
    return ((a + b - 1) // b) * b


def _trunk_kernel_general(x_ref, w_ref, b_ref, o_ref):
    # x_ref: (tm, 1); w_ref, b_ref: (1, width); o_ref: (tm, width)
    x = x_ref[...].astype(jnp.float32)
    o_ref[...] = (x * w_ref[...] + b_ref[...]).astype(o_ref.dtype)


def _trunk_kernel_packed(x_ref, wsel_ref, b_ref, o_ref):
    # x_ref: (R, group); wsel_ref: (group, 128) with wsel[j, l] = w[l % width] iff l // width == j,
    # else 0; b_ref: (1, 128); o_ref: (R, 128).
    # The one-hot matmul performs the lane broadcast *and* the weight multiply on the MXU, leaving
    # only a bias add on the VPU -> lane-dense, HBM-write-bound stores.
    x = x_ref[...].astype(jnp.float32)
    y = jnp.dot(x, wsel_ref[...],
                precision=jax.lax.Precision.HIGHEST,
                preferred_element_type=jnp.float32)
    o_ref[...] = (y + b_ref[...]).astype(o_ref.dtype)


def trunk_forward(x, weight, bias, *, tm=None):
    """Equivalent of Trunk.forward: nn.Linear(1, width) on the last dim.

    x: (..., 1); weight: (width, 1); bias: (width,)  ->  (..., width)
    """
    assert x.shape[-1] == 1
    lead = x.shape[:-1]
    width = weight.shape[0]
    out_dtype = x.dtype

    M = 1
    for d in lead:
        M *= d

    x_flat = x.reshape(M)
    w_row = weight.reshape(width).astype(jnp.float32)
    b_row = bias.reshape(width).astype(jnp.float32)

    packed = (width < _LANES) and (_LANES % width == 0) and (width >= 4)
    if packed:
        group = _LANES // width
        align = 8 * group                 # packed rows per tile must stay a multiple of 8
        per_row = 12 * width + 32         # out double-buffer + f32 dot temp + packed-x, per row
    else:
        group = 1
        align = 8
        per_row = 8 * width + 1024        # out double-buffer + lane-padded (tm, 1) x tile

    if tm is None:
        tile_rows = max(align, (_VMEM_PIPELINE_BUDGET // per_row) // align * align)
    else:
        tile_rows = max(align, _round_up(int(tm), align))
    tile_rows = min(tile_rows, _round_up(M, align))
    if tm is None and M * width * 4 >= (2 << 20):
        # keep at least 2 grid steps so v7x's two TensorCores both get work
        tile_rows = min(tile_rows, _round_up((M + 1) // 2, align))

    M_pad = _round_up(M, tile_rows)
    grid = (M_pad // tile_rows,)

    if M_pad != M:
        x_flat = jnp.pad(x_flat, (0, M_pad - M))

    if packed:
        rows_total = M_pad // group
        rows_tile = tile_rows // group
        x_in = x_flat.reshape(rows_total, group)
        w_full = jnp.tile(w_row, group)                       # (128,) w_full[l] = w[l % width]
        b_in = jnp.tile(b_row, group).reshape(1, _LANES)
        lane = jnp.arange(_LANES, dtype=jnp.int32)
        grp_ids = jnp.arange(group, dtype=jnp.int32)
        w_sel = jnp.where((lane[None, :] // width) == grp_ids[:, None],
                          w_full[None, :],
                          jnp.float32(0.0)).astype(jnp.float32)   # (group, 128)
        kernel = _trunk_kernel_packed
        in_specs = [
            pl.BlockSpec((rows_tile, group), lambda i: (i, 0)),
            pl.BlockSpec((group, _LANES), lambda i: (0, 0)),
            pl.BlockSpec((1, _LANES), lambda i: (0, 0)),
        ]
        out_specs = pl.BlockSpec((rows_tile, _LANES), lambda i: (i, 0))
        out_shape = jax.ShapeDtypeStruct((rows_total, _LANES), out_dtype)
        args = (x_in, w_sel, b_in)
    else:
        x_in = x_flat.reshape(M_pad, 1)
        w_in = w_row.reshape(1, width)
        b_in = b_row.reshape(1, width)
        kernel = _trunk_kernel_general
        in_specs = [
            pl.BlockSpec((tile_rows, 1), lambda i: (i, 0)),
            pl.BlockSpec((1, width), lambda i: (0, 0)),
            pl.BlockSpec((1, width), lambda i: (0, 0)),
        ]
        out_specs = pl.BlockSpec((tile_rows, width), lambda i: (i, 0))
        out_shape = jax.ShapeDtypeStruct((M_pad, width), out_dtype)
        args = (x_in, w_in, b_in)

    out = pl.pallas_call(
        kernel,
        out_shape=out_shape,
        grid_spec=pltpu.PrefetchScalarGridSpec(
            num_scalar_prefetch=0,
            grid=grid,
            in_specs=in_specs,
            out_specs=out_specs,
        ),
        compiler_params=pltpu.CompilerParams(
            dimension_semantics=("parallel",),
            vmem_limit_bytes=_VMEM_LIMIT_BYTES,
        ),
    )(*args)

    # packed (rows_total, 128) and general (M_pad, width) share the same row-major layout,
    # so this reshape is free; then drop the padded rows.
    out = out.reshape(M_pad, width)[:M]
    return out.reshape(*lead, width)


if __name__ == "__main__":
    key = jax.random.PRNGKey(0)

    # --- Primary demo: shapes implied by Trunk (coordinates (batch, seq, 1), width=32) ---
    width = 32
    batch, seq = 2, 8
    kx, kw, kb, k2 = jax.random.split(key, 4)
    # nn.Linear(1, width) init range: U(-1/sqrt(in_features), 1/sqrt(in_features)) = U(-1, 1)
    weight = jax.random.uniform(kw, (width, 1), jnp.float32, -1.0, 1.0)
    bias = jax.random.uniform(kb, (width,), jnp.float32, -1.0, 1.0)
    x = jax.random.normal(kx, (batch, seq, 1), jnp.float32)

    out = trunk_forward(x, weight, bias)
    out = jax.block_until_ready(out)
    ref = x @ weight.T + bias
    assert out.shape == (batch, seq, width)
    assert jnp.allclose(out, ref, atol=1e-5, rtol=1e-5)

    # --- Secondary check: packed path with multiple grid steps + row padding ---
    x2 = jax.random.normal(k2, (3, 67, 1), jnp.float32)      # M=201, not a tile multiple
    out2 = jax.block_until_ready(trunk_forward(x2, weight, bias, tm=64))
    ref2 = x2 @ weight.T + bias
    assert jnp.allclose(out2, ref2, atol=1e-5, rtol=1e-5)

    # --- Tertiary check: general (width >= 128) path with row padding ---
    width3 = 256
    kw3, kb3, kx3 = jax.random.split(jax.random.PRNGKey(1), 3)
    weight3 = jax.random.uniform(kw3, (width3, 1), jnp.float32, -1.0, 1.0)
    bias3 = jax.random.uniform(kb3, (width3,), jnp.float32, -1.0, 1.0)
    x3 = jax.random.normal(kx3, (3, 137, 1), jnp.float32)    # M=411 -> padded to tile multiple
    out3 = jax.block_until_ready(trunk_forward(x3, weight3, bias3))
    ref3 = x3 @ weight3.T + bias3
    assert jnp.allclose(out3, ref3, atol=1e-5, rtol=1e-5)

    print("KERNEL_OK")
</pallas_src>

<mosaic_0001>
module attributes {stable_mosaic.version = 11 : i64} {
  func.func @_trunk_kernel_packed(%arg0: i32, %arg1: memref<8x4xf32, #tpu.memory_space<vmem>>, %arg2: memref<4x128xf32, #tpu.memory_space<vmem>>, %arg3: memref<1x128xf32, #tpu.memory_space<vmem>>, %arg4: memref<8x128xf32, #tpu.memory_space<vmem>>) attributes {dimension_semantics = [#tpu.dimension_semantics<parallel>], iteration_bounds = array<i64: 1>, scalar_prefetch = 0 : i64, scratch_operands = 0 : i64, tpu.core_type = #tpu.core_type<tc>, window_params = [{transform_indices = @transform_0, window_bounds = array<i64: 8, 4>}, {pipeline_mode = #tpu.pipeline_mode<synchronous>, transform_indices = @transform_1, window_bounds = array<i64: 4, 128>}, {pipeline_mode = #tpu.pipeline_mode<synchronous>, transform_indices = @transform_2, window_bounds = array<i64: 1, 128>}, {transform_indices = @transform_3, window_bounds = array<i64: 8, 128>}]} {
    %c0 = arith.constant 0 : index
    %c0_0 = arith.constant 0 : index
    %0 = vector.load %arg1[%c0, %c0_0] : memref<8x4xf32, #tpu.memory_space<vmem>>, vector<8x4xf32>
    %c0_1 = arith.constant 0 : index
    %c0_2 = arith.constant 0 : index
    %1 = vector.load %arg2[%c0_1, %c0_2] : memref<4x128xf32, #tpu.memory_space<vmem>>, vector<4x128xf32>
    %cst = arith.constant dense<0.000000e+00> : vector<8x128xf32>
    %2 = tpu.matmul %0, %1, %cst {dimension_numbers = #tpu.dot_dimension_numbers<[1], [0], [0], [1], [0, 0, 1, 1], [], []>, precision = #tpu.contract_precision<fp32>} : vector<8x4xf32>, vector<4x128xf32>, vector<8x128xf32> -> vector<8x128xf32>
    %c0_3 = arith.constant 0 : index
    %c0_4 = arith.constant 0 : index
    %3 = vector.load %arg3[%c0_3, %c0_4] : memref<1x128xf32, #tpu.memory_space<vmem>>, vector<1x128xf32>
    %4 = vector.broadcast %3 : vector<1x128xf32> to vector<8x128xf32>
    %5 = arith.addf %2, %4 : vector<8x128xf32>
    %c0_5 = arith.constant 0 : index
    %c0_6 = arith.constant 0 : index
    %6 = vector.load %arg4[%c0_5, %c0_6] : memref<8x128xf32, #tpu.memory_space<vmem>>, vector<8x128xf32>
    tpu.vector_store %arg4[%c0_5, %c0_6], %5 {strides = array<i32>} : memref<8x128xf32, #tpu.memory_space<vmem>>, vector<8x128xf32>,
    return
  }
  func.func @transform_0(%arg0: i32) -> (i32, i32) {
    %c0_i32 = arith.constant 0 : i32
    %c0_i32_0 = arith.constant 0 : i32
    return %arg0, %c0_i32 : i32, i32
  }
  func.func @transform_1(%arg0: i32) -> (i32, i32) {
    %c0_i32 = arith.constant 0 : i32
    %c0_i32_0 = arith.constant 0 : i32
    %c0_i32_1 = arith.constant 0 : i32
    return %c0_i32, %c0_i32_0 : i32, i32
  }
  func.func @transform_2(%arg0: i32) -> (i32, i32) {
    %c0_i32 = arith.constant 0 : i32
    %c0_i32_0 = arith.constant 0 : i32
    %c0_i32_1 = arith.constant 0 : i32
    return %c0_i32, %c0_i32_0 : i32, i32
  }
  func.func @transform_3(%arg0: i32) -> (i32, i32) {
    %c0_i32 = arith.constant 0 : i32
    %c0_i32_0 = arith.constant 0 : i32
    return %arg0, %c0_i32 : i32, i32
  }
}

</mosaic_0001>

<bundles_post_ra>
// kernel: tpu_custom_call.1
= control target key start
LH: loop header
LB: loop body
LE: loop exit
PB: predicated region body
PF: predicated region fallthrough
CT: control target
= control target key end

     0   :  { %vm28_vm0 = vcmask 1043456   ;;  %v573_v2 = vmov 0.0   ;;  %vm574_vm1 = vmmov 0   ;;  %vm24_vm2 = vcmask 31744   ;;  %s623_s0 = inlined_call_operand.vmem [shape: f32[8,4], index: 0, kind: input, shape index: {}]   ;;  %s624_s1 = inlined_call_operand.vmem [shape: f32[4,128], index: 1, kind: input, shape index: {}]   ;;  %s625_s2 = inlined_call_operand.vmem [shape: f32[1,128], index: 2, kind: input, shape index: {}]   ;;  %s626_s3 = inlined_call_operand.hbm [shape: f32[8,128], index: 3, kind: output, shape index: {}]  }
   0x1   :  { %v16_v0 = vld [vmem:[%s624_s1] sm:$0xf]  ;;  %521 = vmatprep.subr.mxu0 %v573_v2  ;;  %523 = vmatprep.mubr.msk.f32.mxu0 %vm574_vm1, %v573_v2 }
   0x2   :  { %v15_v1 = vld [vmem:[%s623_s0] sm:$0xff]  ;;  %v30_v3 = vsel %vm28_vm0, %v16_v0, 0 }
   0x3   :  { %8 = vsyncpa [#allocation3], 0  ;;  %v33_v4 = vand.u32 4294901760, %v30_v3  ;;  %v26_v5 = vsel %vm24_vm2, %v15_v1, 0  ;;  %506 = vmatprep.subr.mxu1 %v573_v2  ;;  %508 = vmatprep.mubr.msk.f32.mxu1 %vm574_vm1, %v573_v2  ;;  %v493_v17 = vld [vmem:[%s625_s2] ss:$0 sm:$0xff] }
   0x4   :  { %v98_v6 = vand.u32 4294901760, %v26_v5  ;;  %s575_s16 = smov [#allocation2]  }
   0x5   :  { %v110_v7 = vsub.f32 %v30_v3, %v33_v4  ;;  %522 = vmatpush3.msra.mxu0 %v33_v4  ;;  %507 = vmatpush3.msra.mxu1 %v33_v4  ;;  %s485_s17 = sshll.u32 %s575_s16, 4  ;;  %s486_s17 = int_to_ptr.vmem [resolvable:$true] %s485_s17 }
   0x6   :  { %v99_v8 = vsub.f32 %v26_v5, %v98_v6  ;;  %511 = vmatprep.subr.mxu1 %v573_v2  ;;  %526 = vmatprep.subr.mxu0 %v573_v2  ;;  %s549_s18 = scalar_lea.vmem %s486_s17, 128  ;;  %p554_p1 = scmp.lt.s32.totalorder %s486_s17, %s486_s17 }
   0x7   :  { %v111_v9 = vand.u32 4294901760, %v110_v7  ;;  %p550_p0 = scmp.ne.s32.totalorder %s486_s17, %s549_s18  ;;  %p555_p2 = scmp.lt.s32.totalorder %s549_s18, %s549_s18 }
   0x8   :  { %v100_v10 = vand.u32 4294901760, %v99_v8 }
   0x9   :  { %v112_v11 = vsub.f32 %v110_v7, %v111_v9  ;;  %p556_p3 = por %p555_p2, %p554_p1 }
   0xa   :  { %524 = vmatmul.mubr.f32.vlgmr.msra.gmra.mrb[0].mxu0 %v100_v10  ;;  %v101_v12 = vsub.f32 %v99_v8, %v100_v10 }
   0xb   :  { %v113_v13 = vand.u32 4294901760, %v112_v11  ;;  %527 = vmatpush3.msra.mxu0 %v111_v9  ;;  %528 = vmatprep.mubr.msk.f32.mxu0 %vm574_vm1, %v573_v2  ;;  %p557_p4 = pnand %p556_p3, %p550_p0 }
   0xc   :  { %v102_v14 = vand.u32 4294901760, %v101_v12  ;;  %531 = vmatprep.subr.mxu0 %v573_v2 }
   0xe   :  { %509 = vmatmul.mubr.f32.vlgmr.msra.gmra.mrb[0].mxu1 %v102_v14 }
   0xf   :  { %512 = vmatpush3.msra.mxu1 %v113_v13  ;;  %513 = vmatprep.mubr.msk.f32.mxu1 %vm574_vm1, %v573_v2 }
  0x10   :  { %516 = vmatprep.subr.mxu1 %v573_v2 }
  0x12   :  { %529 = vmatmul.mubr.f32.vlgmr.msra.gmra.mrb[0].mxu0 %v98_v6 }
  0x13   :  { %532 = vmatpush3.msra.mxu0 %v33_v4  ;;  %533 = vmatprep.mubr.msk.f32.mxu0 %vm574_vm1, %v573_v2 }
  0x16   :  { %514 = vmatmul.mubr.f32.vlgmr.msra.gmra.mrb[0].mxu1 %v98_v6 }
  0x17   :  { %517 = vmatpush3.msra.mxu1 %v110_v7  ;;  %518 = vmatprep.mubr.msk.f32.mxu1 %vm574_vm1, %v573_v2 }
  0x1a   :  { %534 = vmatmul.mubr.f32.vlgmr.msra.gmra.mrb[0].mxu0 %v98_v6 }
  0x1e   :  { %519 = vmatmul.mubr.f32.vlgmr.msra.gmra.mrb[0].mxu1 %v99_v8 }
  0xed   :  { %v474_v15 = vpop.f32.mrb[0].mxu0 }
  0xee   :  { %v535_v16 = vpop.f32.mrb[1].mxu0 }
  0xf1   :  { %v254_v18 = vpop.f32.mrb[0].mxu1 }
  0xf2   :  { %v536_v19 = vadd.f32 %v493_v17, %v254_v18  ;;  %v520_v20 = vpop.f32.mrb[1].mxu1 }
  0xf4   :  { %v537_v21 = vadd.f32 %v536_v19, %v474_v15 }
  0xf6   :  { %478 = vst [vmem:[#allocation2] sm:$0xff] %v537_v21 }
  0xf7   :  { %560 = shalt.err (!%p557_p4)
}
  0xf8   :  { %s561_s21 = scalar_lea.hbm %s626_s3, 128 }
  0xf9   :  { %p562_p5 = scmp.ne.s32.totalorder %s626_s3, %s561_s21  ;;  %p565_p6 = scmp.lt.u32.totalorder %s561_s21, %s626_s3 }
  0xfb   :  { %p567_p7 = pnand %p565_p6, %p562_p5 }
  0xfd   :  { %570 = shalt.err (!%p567_p7)
}
  0xfe   :  { %488 = dma.vmem_to_hbm [thread:$0]  %s486_s17, 128, %s626_s3, [#allocation3]  }
  0xff   :  { %571 = dma.done.wait [#allocation3], 128  }
 0x100   :  { %572 = vsyncadd [#allocation3], 4294967168 }
 0x101   :  { %492 = vsyncpa [#allocation3], 1 }

</bundles_post_ra>
